<compile_context>
chip_gen: v6e
topology: v6e:2x2x1
jax: 0.10.0
libtpu: 0.0.40
codegen_flags: <defaults>
</compile_context>

<pallas_src>
import jax
import jax.numpy as jnp
import numpy as np
from jax.experimental import pallas as pl
from jax.experimental.pallas import tpu as pltpu


# -----------------------------------------------------------------------------
# Pallas kernel: ONet_NoCycle point MLP, channels-on-sublanes / points-on-lanes
# -----------------------------------------------------------------------------
def onet_mlp_kernel(x_ref, wp_ref, bp_ref, wh_ref, bh_ref, wo_ref, bo_ref, o_ref):
    # x_ref : (3, TN)     one lane-dense tile of query points
    # wp_ref: (H, 3)      fc_p weight, bn_0 pre-folded
    # bp_ref: (H, 1)      fc_p bias,   bn_0 pre-folded
    # wh_ref: (5, H, H)   fc_0..fc_4 weights, bn_1..bn_5 pre-folded
    # bh_ref: (5, H, 1)   fc_0..fc_4 biases,  bn_1..bn_5 pre-folded
    # wo_ref: (1, H)      fc_out weight
    # bo_ref: (1, 1)      fc_out bias (SMEM scalar)
    # o_ref : (1, TN)     occupancy logits for this tile (lane-dense store)
    net = jnp.dot(wp_ref[...], x_ref[...], preferred_element_type=jnp.float32)
    net = jnp.maximum(net + bp_ref[...], 0.0)                       # (H, TN)

    for l in range(5):  # static unroll: fc_l -> (folded bn_{l+1}) -> relu
        net = jnp.dot(wh_ref[l], net, preferred_element_type=jnp.float32)
        net = jnp.maximum(net + bh_ref[l], 0.0)                     # (H, TN)

    out = jnp.dot(wo_ref[...], net, preferred_element_type=jnp.float32)
    o_ref[...] = out + bo_ref[0, 0]                                 # (1, TN)


def _pick_tile_n(n_points):
    """Pick a lane-dense tile size: few grid steps, but >=2 when possible (v7x)."""
    n128 = pl.cdiv(n_points, 128)
    if n128 <= 1:
        return 128
    if n128 <= 16:
        return 128 * (n128 // 2)        # -> 2 or 3 grid steps
    return 1024                         # production-sized point counts


def onet_forward_pallas(points_3n, kp, *, tile_n=None):
    """points_3n: (3, N) float32 (points on the lane axis) -> (N,) float32."""
    _, N = points_3n.shape
    H = kp["w_p"].shape[0]
    if tile_n is None:
        tile_n = _pick_tile_n(N)
    n_pad = pl.cdiv(N, tile_n) * tile_n
    if n_pad != N:                       # padded tail tile instead of asserting
        points_3n = jnp.pad(points_3n, ((0, 0), (0, n_pad - N)))
    grid = (n_pad // tile_n,)

    def resident(shape):                 # grid-invariant operand (weights/biases)
        nd = len(shape)
        return pl.BlockSpec(shape, lambda i, _nd=nd: (0,) * _nd)

    out = pl.pallas_call(
        onet_mlp_kernel,
        out_shape=jax.ShapeDtypeStruct((1, n_pad), jnp.float32),
        grid=grid,
        in_specs=[
            pl.BlockSpec((3, tile_n), lambda i: (0, i)),            # points tile
            resident((H, 3)), resident((H, 1)),                     # fc_p (+bn_0)
            resident((5, H, H)), resident((5, H, 1)),               # fc_0..4 (+bn_1..5)
            resident((1, H)),                                       # fc_out weight
            pl.BlockSpec(memory_space=pltpu.MemorySpace.SMEM),      # fc_out bias scalar
        ],
        out_specs=pl.BlockSpec((1, tile_n), lambda i: (0, i)),      # lane-dense store
        compiler_params=pltpu.CompilerParams(dimension_semantics=("parallel",)),
    )(points_3n, kp["w_p"], kp["b_p"], kp["w_h"], kp["b_h"],
      kp["w_out"], kp["b_out"])
    return out[0, :N]


# -----------------------------------------------------------------------------
# Parameter handling: raw (PyTorch-like) params and BN folding for the kernel
# -----------------------------------------------------------------------------
def build_onet_params(key, *, hidden_size):
    H = hidden_size - 1                  # ONet_NoCycle: hidden_size -= 1
    ks = jax.random.split(key, 10)

    def nrm(k, shape, s=0.2):
        return (s * jax.random.normal(k, shape)).astype(jnp.float32)

    return dict(
        w_p=nrm(ks[0], (H, 3)),     b_p=nrm(ks[1], (H,)),           # Conv1d(3,H,1)
        w_h=nrm(ks[2], (5, H, H)),  b_h=nrm(ks[3], (5, H)),         # Conv1d(H,H,1) x5
        w_out=nrm(ks[4], (1, H)),   b_out=nrm(ks[5], (1,)),         # Conv1d(H,1,1)
        bn_gamma=(1.0 + 0.1 * jax.random.normal(ks[6], (6, H))).astype(jnp.float32),
        bn_beta=(0.1 * jax.random.normal(ks[7], (6, H))).astype(jnp.float32),
        bn_mean=(0.1 * jax.random.normal(ks[8], (6, H))).astype(jnp.float32),
        bn_var=(1.0 + 0.2 * jax.random.uniform(ks[9], (6, H))).astype(jnp.float32),
    )


def fold_params_for_kernel(raw, eps=1e-5):
    """Fold eval-mode BatchNorm affine into the preceding 1x1-conv weights."""
    scale = raw["bn_gamma"] / jnp.sqrt(raw["bn_var"] + eps)          # (6, H)
    shift = raw["bn_beta"] - raw["bn_mean"] * scale                  # (6, H)
    return dict(
        w_p=raw["w_p"] * scale[0][:, None],                          # (H, 3)
        b_p=(raw["b_p"] * scale[0] + shift[0])[:, None],             # (H, 1)
        w_h=raw["w_h"] * scale[1:6][:, :, None],                     # (5, H, H)
        b_h=(raw["b_h"] * scale[1:6] + shift[1:6])[:, :, None],      # (5, H, 1)
        w_out=raw["w_out"],                                          # (1, H)
        b_out=raw["b_out"].reshape(1, 1).astype(jnp.float32),        # (1, 1)
    )


def onet_nocycle_forward(raw_params, can_points, local_point_feature=None,
                         cycle_distance=None, *, tile_n=None):
    """Forward pass matching ONet_NoCycle.forward (eval mode).

    local_point_feature / cycle_distance are accepted for API parity but —
    exactly as in the PyTorch module — never influence the output.
    """
    B, T, _ = can_points.shape
    kp = fold_params_for_kernel(raw_params)
    pts = can_points.reshape(B * T, 3).astype(jnp.float32).T         # (3, N)
    occ = onet_forward_pallas(pts, kp, tile_n=tile_n)                # (N,)
    return occ.reshape(B, T)


def onet_forward_ref(raw, can_points, eps=1e-5):
    """Pure-JAX reference of the un-folded module math (eval-mode BN)."""
    B, T, _ = can_points.shape
    x = can_points.reshape(B * T, 3).astype(jnp.float32)
    scale = raw["bn_gamma"] / jnp.sqrt(raw["bn_var"] + eps)
    shift = raw["bn_beta"] - raw["bn_mean"] * scale

    net = x @ raw["w_p"].T + raw["b_p"]
    net = jax.nn.relu(net * scale[0] + shift[0])
    for l in range(5):
        net = net @ raw["w_h"][l].T + raw["b_h"][l]
        net = jax.nn.relu(net * scale[l + 1] + shift[l + 1])
    out = net @ raw["w_out"].T + raw["b_out"]
    return out.reshape(B, T)


# -----------------------------------------------------------------------------
if __name__ == "__main__":
    key = jax.random.PRNGKey(0)
    kparam, kdata = jax.random.split(key)

    # ONet_NoCycle(num_joints=4, point_feature_len=8, hidden_size=33) -> H = 32
    num_joints, point_feature_len, hidden_size = 4, 8, 33
    raw_params = build_onet_params(kparam, hidden_size=hidden_size)

    B, T = 2, 128
    k1, k2, k3 = jax.random.split(kdata, 3)
    can_points = jax.random.normal(k1, (B, T, 3), dtype=jnp.float32)
    # Present in the call signature but unused by the no-cycle forward:
    local_point_feature = jax.random.normal(k2, (B, T, point_feature_len),
                                            dtype=jnp.float32)
    cycle_distance = jax.random.normal(k3, (B, T, 1), dtype=jnp.float32)

    occupancy = onet_nocycle_forward(raw_params, can_points,
                                     local_point_feature, cycle_distance)
    occupancy = jax.block_until_ready(occupancy)

    # Correctness check against the pure-JAX (un-folded BN) reference.
    ref = onet_forward_ref(raw_params, can_points)
    np.testing.assert_allclose(np.asarray(occupancy), np.asarray(ref),
                               rtol=1e-2, atol=1e-4)
    assert occupancy.shape == (B, T)
    assert bool(jnp.all(jnp.isfinite(occupancy)))

    print("KERNEL_OK")
</pallas_src>

<mosaic_0001>
module attributes {stable_mosaic.version = 11 : i64} {
  func.func @onet_mlp_kernel(%arg0: i32, %arg1: memref<3x128xf32, #tpu.memory_space<vmem>>, %arg2: memref<32x3xf32, #tpu.memory_space<vmem>>, %arg3: memref<32x1xf32, #tpu.memory_space<vmem>>, %arg4: memref<5x32x32xf32, #tpu.memory_space<vmem>>, %arg5: memref<5x32x1xf32, #tpu.memory_space<vmem>>, %arg6: memref<1x32xf32, #tpu.memory_space<vmem>>, %arg7: memref<1x1xf32, #tpu.memory_space<smem>>, %arg8: memref<1x128xf32, #tpu.memory_space<vmem>>) attributes {dimension_semantics = [#tpu.dimension_semantics<parallel>], iteration_bounds = array<i64: 2>, scalar_prefetch = 0 : i64, scratch_operands = 0 : i64, tpu.core_type = #tpu.core_type<tc>, window_params = [{transform_indices = @transform_0, window_bounds = array<i64: 3, 128>}, {pipeline_mode = #tpu.pipeline_mode<synchronous>, transform_indices = @transform_1, window_bounds = array<i64: 32, 3>}, {pipeline_mode = #tpu.pipeline_mode<synchronous>, transform_indices = @transform_2, window_bounds = array<i64: 32, 1>}, {pipeline_mode = #tpu.pipeline_mode<synchronous>, transform_indices = @transform_3, window_bounds = array<i64: 5, 32, 32>}, {pipeline_mode = #tpu.pipeline_mode<synchronous>, transform_indices = @transform_4, window_bounds = array<i64: 5, 32, 1>}, {pipeline_mode = #tpu.pipeline_mode<synchronous>, transform_indices = @transform_5, window_bounds = array<i64: 1, 32>}, {transform_indices = @transform_6, window_bounds = array<i64: 1, 1>}, {transform_indices = @transform_7, window_bounds = array<i64: 1, 128>}]} {
    %c0 = arith.constant 0 : index
    %c0_0 = arith.constant 0 : index
    %0 = vector.load %arg2[%c0, %c0_0] : memref<32x3xf32, #tpu.memory_space<vmem>>, vector<32x3xf32>
    %c0_1 = arith.constant 0 : index
    %c0_2 = arith.constant 0 : index
    %1 = vector.load %arg1[%c0_1, %c0_2] : memref<3x128xf32, #tpu.memory_space<vmem>>, vector<3x128xf32>
    %cst = arith.constant dense<0.000000e+00> : vector<32x128xf32>
    %2 = tpu.matmul %0, %1, %cst {dimension_numbers = #tpu.dot_dimension_numbers<[1], [0], [0], [1], [0, 0, 1, 1], [], []>} : vector<32x3xf32>, vector<3x128xf32>, vector<32x128xf32> -> vector<32x128xf32>
    %c0_3 = arith.constant 0 : index
    %c0_4 = arith.constant 0 : index
    %3 = vector.load %arg3[%c0_3, %c0_4] : memref<32x1xf32, #tpu.memory_space<vmem>>, vector<32x1xf32>
    %4 = vector.broadcast %3 : vector<32x1xf32> to vector<32x128xf32>
    %5 = arith.addf %2, %4 : vector<32x128xf32>
    %cst_5 = arith.constant 0.000000e+00 : f32
    %6 = vector.broadcast %cst_5 : f32 to vector<32x128xf32>
    %7 = arith.maximumf %5, %6 : vector<32x128xf32>
    %c0_6 = arith.constant 0 : index
    %c0_7 = arith.constant 0 : index
    %c0_8 = arith.constant 0 : index
    %8 = vector.load %arg4[%c0_6, %c0_7, %c0_8] : memref<5x32x32xf32, #tpu.memory_space<vmem>>, vector<1x32x32xf32>
    %9 = vector.shape_cast %8 : vector<1x32x32xf32> to vector<32x32xf32>
    %cst_9 = arith.constant dense<0.000000e+00> : vector<32x128xf32>
    %10 = tpu.matmul %9, %7, %cst_9 {dimension_numbers = #tpu.dot_dimension_numbers<[1], [0], [0], [1], [0, 0, 1, 1], [], []>} : vector<32x32xf32>, vector<32x128xf32>, vector<32x128xf32> -> vector<32x128xf32>
    %c0_10 = arith.constant 0 : index
    %c0_11 = arith.constant 0 : index
    %c0_12 = arith.constant 0 : index
    %11 = vector.load %arg5[%c0_10, %c0_11, %c0_12] : memref<5x32x1xf32, #tpu.memory_space<vmem>>, vector<1x32x1xf32>
    %12 = vector.shape_cast %11 : vector<1x32x1xf32> to vector<32x1xf32>
    %13 = vector.broadcast %12 : vector<32x1xf32> to vector<32x128xf32>
    %14 = arith.addf %10, %13 : vector<32x128xf32>
    %cst_13 = arith.constant 0.000000e+00 : f32
    %15 = vector.broadcast %cst_13 : f32 to vector<32x128xf32>
    %16 = arith.maximumf %14, %15 : vector<32x128xf32>
    %c1 = arith.constant 1 : index
    %c0_14 = arith.constant 0 : index
    %c0_15 = arith.constant 0 : index
    %17 = vector.load %arg4[%c1, %c0_14, %c0_15] : memref<5x32x32xf32, #tpu.memory_space<vmem>>, vector<1x32x32xf32>
    %18 = vector.shape_cast %17 : vector<1x32x32xf32> to vector<32x32xf32>
    %cst_16 = arith.constant dense<0.000000e+00> : vector<32x128xf32>
    %19 = tpu.matmul %18, %16, %cst_16 {dimension_numbers = #tpu.dot_dimension_numbers<[1], [0], [0], [1], [0, 0, 1, 1], [], []>} : vector<32x32xf32>, vector<32x128xf32>, vector<32x128xf32> -> vector<32x128xf32>
    %c1_17 = arith.constant 1 : index
    %c0_18 = arith.constant 0 : index
    %c0_19 = arith.constant 0 : index
    %20 = vector.load %arg5[%c1_17, %c0_18, %c0_19] : memref<5x32x1xf32, #tpu.memory_space<vmem>>, vector<1x32x1xf32>
    %21 = vector.shape_cast %20 : vector<1x32x1xf32> to vector<32x1xf32>
    %22 = vector.broadcast %21 : vector<32x1xf32> to vector<32x128xf32>
    %23 = arith.addf %19, %22 : vector<32x128xf32>
    %cst_20 = arith.constant 0.000000e+00 : f32
    %24 = vector.broadcast %cst_20 : f32 to vector<32x128xf32>
    %25 = arith.maximumf %23, %24 : vector<32x128xf32>
    %c2 = arith.constant 2 : index
    %c0_21 = arith.constant 0 : index
    %c0_22 = arith.constant 0 : index
    %26 = vector.load %arg4[%c2, %c0_21, %c0_22] : memref<5x32x32xf32, #tpu.memory_space<vmem>>, vector<1x32x32xf32>
    %27 = vector.shape_cast %26 : vector<1x32x32xf32> to vector<32x32xf32>
    %cst_23 = arith.constant dense<0.000000e+00> : vector<32x128xf32>
    %28 = tpu.matmul %27, %25, %cst_23 {dimension_numbers = #tpu.dot_dimension_numbers<[1], [0], [0], [1], [0, 0, 1, 1], [], []>} : vector<32x32xf32>, vector<32x128xf32>, vector<32x128xf32> -> vector<32x128xf32>
    %c2_24 = arith.constant 2 : index
    %c0_25 = arith.constant 0 : index
    %c0_26 = arith.constant 0 : index
    %29 = vector.load %arg5[%c2_24, %c0_25, %c0_26] : memref<5x32x1xf32, #tpu.memory_space<vmem>>, vector<1x32x1xf32>
    %30 = vector.shape_cast %29 : vector<1x32x1xf32> to vector<32x1xf32>
    %31 = vector.broadcast %30 : vector<32x1xf32> to vector<32x128xf32>
    %32 = arith.addf %28, %31 : vector<32x128xf32>
    %cst_27 = arith.constant 0.000000e+00 : f32
    %33 = vector.broadcast %cst_27 : f32 to vector<32x128xf32>
    %34 = arith.maximumf %32, %33 : vector<32x128xf32>
    %c3 = arith.constant 3 : index
    %c0_28 = arith.constant 0 : index
    %c0_29 = arith.constant 0 : index
    %35 = vector.load %arg4[%c3, %c0_28, %c0_29] : memref<5x32x32xf32, #tpu.memory_space<vmem>>, vector<1x32x32xf32>
    %36 = vector.shape_cast %35 : vector<1x32x32xf32> to vector<32x32xf32>
    %cst_30 = arith.constant dense<0.000000e+00> : vector<32x128xf32>
    %37 = tpu.matmul %36, %34, %cst_30 {dimension_numbers = #tpu.dot_dimension_numbers<[1], [0], [0], [1], [0, 0, 1, 1], [], []>} : vector<32x32xf32>, vector<32x128xf32>, vector<32x128xf32> -> vector<32x128xf32>
    %c3_31 = arith.constant 3 : index
    %c0_32 = arith.constant 0 : index
    %c0_33 = arith.constant 0 : index
    %38 = vector.load %arg5[%c3_31, %c0_32, %c0_33] : memref<5x32x1xf32, #tpu.memory_space<vmem>>, vector<1x32x1xf32>
    %39 = vector.shape_cast %38 : vector<1x32x1xf32> to vector<32x1xf32>
    %40 = vector.broadcast %39 : vector<32x1xf32> to vector<32x128xf32>
    %41 = arith.addf %37, %40 : vector<32x128xf32>
    %cst_34 = arith.constant 0.000000e+00 : f32
    %42 = vector.broadcast %cst_34 : f32 to vector<32x128xf32>
    %43 = arith.maximumf %41, %42 : vector<32x128xf32>
    %c4 = arith.constant 4 : index
    %c0_35 = arith.constant 0 : index
    %c0_36 = arith.constant 0 : index
    %44 = vector.load %arg4[%c4, %c0_35, %c0_36] : memref<5x32x32xf32, #tpu.memory_space<vmem>>, vector<1x32x32xf32>
    %45 = vector.shape_cast %44 : vector<1x32x32xf32> to vector<32x32xf32>
    %cst_37 = arith.constant dense<0.000000e+00> : vector<32x128xf32>
    %46 = tpu.matmul %45, %43, %cst_37 {dimension_numbers = #tpu.dot_dimension_numbers<[1], [0], [0], [1], [0, 0, 1, 1], [], []>} : vector<32x32xf32>, vector<32x128xf32>, vector<32x128xf32> -> vector<32x128xf32>
    %c4_38 = arith.constant 4 : index
    %c0_39 = arith.constant 0 : index
    %c0_40 = arith.constant 0 : index
    %47 = vector.load %arg5[%c4_38, %c0_39, %c0_40] : memref<5x32x1xf32, #tpu.memory_space<vmem>>, vector<1x32x1xf32>
    %48 = vector.shape_cast %47 : vector<1x32x1xf32> to vector<32x1xf32>
    %49 = vector.broadcast %48 : vector<32x1xf32> to vector<32x128xf32>
    %50 = arith.addf %46, %49 : vector<32x128xf32>
    %cst_41 = arith.constant 0.000000e+00 : f32
    %51 = vector.broadcast %cst_41 : f32 to vector<32x128xf32>
    %52 = arith.maximumf %50, %51 : vector<32x128xf32>
    %c0_42 = arith.constant 0 : index
    %c0_43 = arith.constant 0 : index
    %53 = vector.load %arg6[%c0_42, %c0_43] : memref<1x32xf32, #tpu.memory_space<vmem>>, vector<1x32xf32>
    %cst_44 = arith.constant dense<0.000000e+00> : vector<1x128xf32>
    %54 = tpu.matmul %53, %52, %cst_44 {dimension_numbers = #tpu.dot_dimension_numbers<[1], [0], [0], [1], [0, 0, 1, 1], [], []>} : vector<1x32xf32>, vector<32x128xf32>, vector<1x128xf32> -> vector<1x128xf32>
    %c0_45 = arith.constant 0 : index
    %c0_46 = arith.constant 0 : index
    %55 = memref.load %arg7[%c0_45, %c0_46] : memref<1x1xf32, #tpu.memory_space<smem>>
    %56 = vector.broadcast %55 : f32 to vector<1x128xf32>
    %57 = arith.addf %54, %56 : vector<1x128xf32>
    %c0_47 = arith.constant 0 : index
    %c0_48 = arith.constant 0 : index
    %58 = vector.load %arg8[%c0_47, %c0_48] : memref<1x128xf32, #tpu.memory_space<vmem>>, vector<1x128xf32>
    tpu.vector_store %arg8[%c0_47, %c0_48], %57 {strides = array<i32>} : memref<1x128xf32, #tpu.memory_space<vmem>>, vector<1x128xf32>,
    return
  }
  func.func @transform_0(%arg0: i32) -> (i32, i32) {
    %c0_i32 = arith.constant 0 : i32
    %c0_i32_0 = arith.constant 0 : i32
    return %c0_i32, %arg0 : i32, i32
  }
  func.func @transform_1(%arg0: i32) -> (i32, i32) {
    %c0_i32 = arith.constant 0 : i32
    %c0_i32_0 = arith.constant 0 : i32
    %c0_i32_1 = arith.constant 0 : i32
    return %c0_i32, %c0_i32_0 : i32, i32
  }
  func.func @transform_2(%arg0: i32) -> (i32, i32) {
    %c0_i32 = arith.constant 0 : i32
    %c0_i32_0 = arith.constant 0 : i32
    %c0_i32_1 = arith.constant 0 : i32
    return %c0_i32, %c0_i32_0 : i32, i32
  }
  func.func @transform_3(%arg0: i32) -> (i32, i32, i32) {
    %c0_i32 = arith.constant 0 : i32
    %c0_i32_0 = arith.constant 0 : i32
    %c0_i32_1 = arith.constant 0 : i32
    %c0_i32_2 = arith.constant 0 : i32
    return %c0_i32, %c0_i32_0, %c0_i32_1 : i32, i32, i32
  }
  func.func @transform_4(%arg0: i32) -> (i32, i32, i32) {
    %c0_i32 = arith.constant 0 : i32
    %c0_i32_0 = arith.constant 0 : i32
    %c0_i32_1 = arith.constant 0 : i32
    %c0_i32_2 = arith.constant 0 : i32
    return %c0_i32, %c0_i32_0, %c0_i32_1 : i32, i32, i32
  }
  func.func @transform_5(%arg0: i32) -> (i32, i32) {
    %c0_i32 = arith.constant 0 : i32
    %c0_i32_0 = arith.constant 0 : i32
    %c0_i32_1 = arith.constant 0 : i32
    return %c0_i32, %c0_i32_0 : i32, i32
  }
  func.func @transform_6(%arg0: i32) -> (i32, i32) {
    %c0_i32 = arith.constant 0 : i32
    %c0_i32_0 = arith.constant 0 : i32
    %c0_i32_1 = arith.constant 0 : i32
    return %c0_i32, %c0_i32_0 : i32, i32
  }
  func.func @transform_7(%arg0: i32) -> (i32, i32) {
    %c0_i32 = arith.constant 0 : i32
    %c0_i32_0 = arith.constant 0 : i32
    return %c0_i32, %arg0 : i32, i32
  }
}

</mosaic_0001>

<bundles_post_ra>
// kernel: tpu_custom_call.1
= control target key start
LH: loop header
LB: loop body
LE: loop exit
PB: predicated region body
PF: predicated region fallthrough
CT: control target
= control target key end

     0   :  { %s1831_s0 = inlined_call_operand.vmem [shape: f32[3,256], index: 0, kind: input, shape index: {}]   ;;  %s1832_s1 = inlined_call_operand.vmem [shape: f32[32,3], index: 1, kind: input, shape index: {}]   ;;  %s1833_s2 = inlined_call_operand.vmem [shape: f32[32,1], index: 2, kind: input, shape index: {}]   ;;  %s1834_s3 = inlined_call_operand.vmem [shape: f32[5,32,32], index: 3, kind: input, shape index: {}]   ;;  %s1835_s4 = inlined_call_operand.vmem [shape: f32[5,32,1], index: 4, kind: input, shape index: {}]   ;;  %s1836_s5 = inlined_call_operand.vmem [shape: f32[1,32], index: 5, kind: input, shape index: {}]   ;;  %s1837_s6 = inlined_call_operand.<no memory space> [shape: f32[1,1], index: 6, kind: input, shape index: {}]   ;;  %s1838_s7 = inlined_call_operand.hbm [shape: f32[1,256], index: 7, kind: output, shape index: {}]  }
   0x1   :  { %12 = sst [smem:[#allocation2]] %s1837_s6 }
   0x2   :  { %13 = vsyncpa [#allocation4], 0 }
   0x3   :  { %15 = vsyncpa [#allocation4 + $0x1], 0  ;;  %s1566_s26 = smov 0   ;;  %s1568_s27 = smov 0  }
   0x4   :  { %s1570_s28 = smov 0   ;;  %s1572_s29 = smov 0  }
   0x5 LB: > { %s1587_s6 = sadd.s32 4294967295, %s1517_s29   ;;  %s1208_s30 = sadd.s32 4294967294, %s1517_s29   ;;  %s1517_s29 = sphi %s1572_s29, %s1844_s29   ;;  %s1513_s28 = sphi %s1570_s28, %s1843_s28   ;;  %s1509_s27 = sphi %s1568_s27, %s1842_s27   ;;  %s1505_s26 = sphi %s1566_s26, %s1841_s26  }
   0x6   : > { %s1591_s8 = sadd.s32 1, %s1517_s29   ;;  %s180_s9 = sadd.s32 1, %s1513_s28 }
   0x7   : > { %s177_s10 = ssub.s32 %s1517_s29, %s1591_s8  ;;  %p190_p0 = scmp.ne.s32.totalorder %s1513_s28, %s1509_s27 }
   0x8   : > { %p178_p1 = scmp.eq.s32.totalorder %s177_s10, 0  ;;  %p191_p2 = scmp.eq.s32.totalorder %s1587_s6, 1 }
   0x9   : > { %p196_p3 = scmp.ne.s32.totalorder %s1509_s27, %s1505_s26  ;;  %p197_p4 = scmp.eq.s32.totalorder %s1208_s30, 1 }
   0xa   : > { %s1602_s11 = scalar_select %p178_p1, %s1513_s28, %s180_s9  }
   0xb   : > { %p1604_p5 = por %p191_p2, %p190_p0  ;;  %p1608_p6 = por %p197_p4, %p196_p3 }
   0xc   : > { %p1211_p7 = scmp.ge.s32.totalorder %s1517_s29, 1  ;;  %p240_p8 = scmp.lt.s32.totalorder %s1517_s29, 3 }
   0xe   : > { %p241_p9 = pnand %p1211_p7, %p240_p8 }
   0xf   : > { %p270_p10 = scmp.lt.s32.totalorder (!%p241_p9), %s1587_s6, 1  ;;  %s1064_s9 = sld [smem:[#allocation2]] (!%p241_p9) }
  0x10   : > { %244 = sbr.rel (%p241_p9) target bundleno = 1489 (0x5d1), region = 48  ;;  %s268_s10 = sand.u32 (!%p241_p9), 1, %s1509_s27  }
  0x11   : > { %s1271_s14 = sshll.u32 (!%p241_p9), %s1587_s6, 4  ;;  %s269_s15 = scalar_lea.vmem (!%p241_p9), [#allocation3], %s268_s10 }
  0x12   : > { %s1153_s16 = sshll.u32 (!%p241_p9), %s269_s15, 4  ;;  %s1796_s19 = scalar_lea.hbm (!%p241_p9), %s1838_s7, %s1271_s14  ;;  %s1154_s16 = int_to_ptr.vmem [resolvable:$true] %s1153_s16 }
  0x13   : > { %s1141_s20 = scalar_lea.sflag (!%p241_p9), [#allocation4], %s268_s10  ;;  %s1522_s22 = smov (!%p241_p9), [#allocation3]  }
  0x15   : > { %v274_v0 = vld [vmem:[%s1832_s1] sm:$0xff]  ;;  %vm303_vm0 = vcmask 23552   ;;  %v282_v1 = vld [vmem:[%s1833_s2 + $0x18] sm:$0xff]  ;;  %s271_s18 = scalar_select %p270_p10, %s1587_s6, 1  ;;  %v1519_v2 = vmov 0   ;;  %v280_v3 = vld [vmem:[%s1833_s2 + $0x8] sm:$0xff] }
  0x16   : > { %1326 = vmatprep.mubr.msk.f32.mxu0 %vm303_vm0, %v274_v0  ;;  %1455 = vset.pattern.permute.xlu0 %v1519_v2  ;;  %vm316_vm1 = vcmask 1042432   ;;  %v281_v4 = vld [vmem:[%s1833_s2 + $0x10] sm:$0xff]  ;;  %v279_v5 = vld [vmem:[%s1833_s2] sm:$0xff]  ;;  %v275_v7 = vld [vmem:[%s1832_s1 + $0x8] sm:$0xff]  ;;  %vm437_vm2 = vcmask 261120   ;;  %vm1521_vm3 = vmmov 0  }
  0x17   : > { %1456 = vset.pattern.permute.xlu1 %v1519_v2  ;;  %300 = vperm.xlu0 %1455, %v282_v1   ;;  %s1212_s21 = sshll.u32 %s271_s18, 2  ;;  %v276_v8 = vld [vmem:[%s1832_s1 + $0x10] sm:$0xff]  ;;  %v416_v9 = vld [vmem:[%s1835_s4 + $0x18] sm:$0xff]  ;;  %v414_v12 = vld [vmem:[%s1835_s4 + $0x8] sm:$0xff]  ;;  %s1461_s6 = sshll.u32 %s1522_s22, 4  ;;  %s1462_s6 = int_to_ptr.vmem [resolvable:$false] %s1461_s6 }
  0x18   : > { %290 = vperm.xlu1 %1456, %v280_v3   ;;  %s273_s30 = scalar_lea.vmem %s1831_s0, %s1212_s21  ;;  %v415_v10 = vld [vmem:[%s1835_s4 + $0x10] sm:$0xff]  ;;  %v277_v11 = vld [vmem:[%s1832_s1 + $0x18] sm:$0xff]  ;;  %v413_v13 = vld [vmem:[%s1835_s4] sm:$0xff]  ;;  %s1457_s21 = scalar_lea.vmem %s1154_s16, 16 }
  0x19   : > { %v278_v6 = vld [vmem:[%s273_s30] sm:$0x7]  ;;  %v1229_v14 = vld [vmem:[%s1835_s4 + $0x38] sm:$0xff]  ;;  %v1228_v15 = vld [vmem:[%s1835_s4 + $0x30] sm:$0xff]  ;;  %p1458_p11 = scmp.ne.s32.totalorder %s1154_s16, %s1457_s21  ;;  %s1463_s23 = scalar_lea.vmem %s1462_s6, 32 }
  0x1a   : > { %1324 = vmatprep.subr.msk.mxu0 %vm316_vm1, %v278_v6  ;;  %v1227_v16 = vld [vmem:[%s1835_s4 + $0x28] sm:$0xff]  ;;  %v1226_v17 = vld [vmem:[%s1835_s4 + $0x20] sm:$0xff]  ;;  %v1241_v18 = vld [vmem:[%s1835_s4 + $0x58] sm:$0xff]  ;;  %p1464_p0 = scmp.lt.s32.totalorder %s1154_s16, %s1462_s6  ;;  %p1465_p1 = scmp.lt.s32.totalorder %s1463_s23, %s1457_s21 }
  0x1b   : > { %295 = vperm.xlu0 %1455, %v281_v4   ;;  %1325 = vmatpush3.msk.msra.mxu0 %vm316_vm1, %v278_v6  ;;  %v1240_v19 = vld [vmem:[%s1835_s4 + $0x50] sm:$0xff]  ;;  %v1239_v20 = vld [vmem:[%s1835_s4 + $0x48] sm:$0xff]  ;;  %v1238_v21 = vld [vmem:[%s1835_s4 + $0x40] sm:$0xff]  ;;  %p1459_p12 = pnand %p1458_p11, %p1604_p5 }
  0x1c   : > { %285 = vperm.xlu1 %1456, %v279_v5   ;;  %1327 = vmatmul.mubr.msk.f32.vlgmr.msra.gmra.mxu0 %vm303_vm0, %v275_v7  ;;  %v1253_v22 = vld [vmem:[%s1835_s4 + $0x78] sm:$0xff]  ;;  %v1252_v23 = vld [vmem:[%s1835_s4 + $0x70] sm:$0xff]  ;;  %v1251_v24 = vld [vmem:[%s1835_s4 + $0x68] sm:$0xff]  ;;  %p1466_p2 = por %p1465_p1, %p1464_p0 }
  0x1d   : > { %1329 = vmatprep.mubr.msk.f32.mxu0 %vm303_vm0, %v276_v8  ;;  %v1250_v25 = vld [vmem:[%s1835_s4 + $0x60] sm:$0xff]  ;;  %v1265_v26 = vld [vmem:[%s1835_s4 + $0x98] sm:$0xff]  ;;  %v1264_v27 = vld [vmem:[%s1835_s4 + $0x90] sm:$0xff]  ;;  %p1460_p13 = pneg %p1459_p12 }
  0x1e   : > { %v1263_v28 = vld [vmem:[%s1835_s4 + $0x88] sm:$0xff]  ;;  %v1262_v29 = vld [vmem:[%s1835_s4 + $0x80] sm:$0xff]  ;;  %v411_v48 = vld [vmem:[%s1834_s3 + $0x10] sm:$0xff] }
  0x1f   : > { %434 = vperm.xlu0 %1455, %v416_v9   ;;  %v409_v30 = vld [vmem:[%s1834_s3] sm:$0xff]  ;;  %v410_v47 = vld [vmem:[%s1834_s3 + $0x8] sm:$0xff]  ;;  %v412_v49 = vld [vmem:[%s1834_s3 + $0x18] sm:$0xff]  ;;  %p1467_p3 = pnand %p1466_p2, %p1460_p13 }
  0x20   : > { %429 = vperm.xlu1 %1456, %v415_v10   ;;  %1330 = vmatmul.mubr.msk.f32.gmra.mxu0 %vm303_vm0, %v277_v11  ;;  %v1222_v50 = vld [vmem:[%s1834_s3 + $0x20] sm:$0xff]  ;;  %v1223_v3 = vld [vmem:[%s1834_s3 + $0x28] sm:$0xff]  ;;  %v1224_v4 = vld [vmem:[%s1834_s3 + $0x30] sm:$0xff] }
  0x21   : > { %1340 = vmatprep.mubr.msk.f32.mxu1 %vm437_vm2, %v409_v30  ;;  %1354 = vmatprep.mubr.msk.f32.mxu0 %vm437_vm2, %v1222_v50  ;;  %v1225_v5 = vld [vmem:[%s1834_s3 + $0x38] sm:$0xff]  ;;  %v1234_v6 = vld [vmem:[%s1834_s3 + $0x40] sm:$0xff] }
  0x23   : > { %424 = vperm.xlu0 %1455, %v414_v12  }
  0x24   : > { %419 = vperm.xlu1 %1456, %v413_v13  }
  0x27   : > { %566 = vperm.xlu0 %1455, %v1229_v14  }
  0x28   : > { %561 = vperm.xlu1 %1456, %v1228_v15  }
  0x2b   : > { %556 = vperm.xlu0 %1455, %v1227_v16  }
  0x2c   : > { %551 = vperm.xlu1 %1456, %v1226_v17  }
  0x2f   : > { %697 = vperm.xlu0 %1455, %v1241_v18  }
  0x30   : > { %692 = vperm.xlu1 %1456, %v1240_v19  }
  0x33   : > { %687 = vperm.xlu0 %1455, %v1239_v20  }
  0x34   : > { %682 = vperm.xlu1 %1456, %v1238_v21  }
  0x37   : > { %828 = vperm.xlu0 %1455, %v1253_v22  }
  0x38   : > { %823 = vperm.xlu1 %1456, %v1252_v23   ;;  %v1235_v23 = vld [vmem:[%s1834_s3 + $0x48] sm:$0xff] }
  0x3b   : > { %818 = vperm.xlu0 %1455, %v1251_v24   ;;  %v1236_v24 = vld [vmem:[%s1834_s3 + $0x50] sm:$0xff] }
  0x3c   : > { %813 = vperm.xlu1 %1456, %v1250_v25   ;;  %v1237_v25 = vld [vmem:[%s1834_s3 + $0x58] sm:$0xff] }
  0x3f   : > { %959 = vperm.xlu0 %1455, %v1265_v26   ;;  %v1246_v26 = vld [vmem:[%s1834_s3 + $0x60] sm:$0xff] }
  0x40   : > { %954 = vperm.xlu1 %1456, %v1264_v27  }
  0x43   : > { %949 = vperm.xlu0 %1455, %v1263_v28  }
  0x44   : > { %944 = vperm.xlu1 %1456, %v1262_v29  }
  0x92   : > { %v301_v31 = vpop.permute.xlu0 %300 }
  0x93   : > { %v291_v33 = vpop.permute.xlu1 %290 }
  0x96   : > { %v296_v37 = vpop.permute.xlu0 %295 }
  0x97   : > { %v286_v42 = vpop.permute.xlu1 %285 }
  0x9a   : > { %v435_v51 = vpop.permute.xlu0 %434 }
  0x9b   : > { %v430_v53 = vpop.permute.xlu1 %429 }
  0x9e   : > { %v425_v57 = vpop.permute.xlu0 %424 }
  0x9f   : > { %v420_v62 = vpop.permute.xlu1 %419 }
  0xa2   : > { %v567_v7 = vpop.permute.xlu0 %566 }
  0xa3   : > { %v562_v9 = vpop.permute.xlu1 %561 }
  0xa6   : > { %v557_v13 = vpop.permute.xlu0 %556 }
  0xa7   : > { %v552_v18 = vpop.permute.xlu1 %551 }
  0xaa   : > { %v698_v27 = vpop.permute.xlu0 %697 }
  0xab   : > { %v693_v29 = vpop.permute.xlu1 %692 }
  0xdc   : > { %v1328_v32 = vpop.f32.mrf.mxu0 }
  0xdd   : > { %v392_v39 = vadd.f32 %v1328_v32, %v291_v33  ;;  %v688_v33 = vpop.permute.xlu0 %687 }
  0xde   : > { %v386_v34 = vpop.f32.mrf.mxu0 }
  0xdf   : > { %v387_v43 = vadd.f32 %v386_v34, %v286_v42  ;;  %v406_v45 = vmax.f32 %v392_v39, 0.0 }
  0xe0   : > { %v1331_v35 = vpop.f32.mrf.mxu0 }
  0xe1   : > { %v402_v36 = vadd.f32 %v1331_v35, %v301_v31  ;;  %v405_v46 = vmax.f32 %v387_v43, 0.0  ;;  %v1247_v43 = vld [vmem:[%s1834_s3 + $0x68] sm:$0xff] }
  0xe2   : > { %v396_v38 = vpop.f32.mrf.mxu0 }
  0xe3   : > { %v408_v40 = vmax.f32 %v402_v36, 0.0  ;;  %v397_v41 = vadd.f32 %v396_v38, %v296_v37  ;;  %v683_v38 = vpop.permute.xlu1 %682 }
  0xe5   : > { %v407_v44 = vmax.f32 %v397_v41, 0.0  ;;  %1332 = vmatprep.subr.mxu1 %v408_v40 }
  0xe6   : > { %1333 = vmatpush3.msra.mxu1 %v408_v40 }
  0xe7   : > { %1334 = vmatprep.subr.mxu1 %v407_v44 }
  0xe8   : > { %1335 = vmatpush3.msra.mxu1 %v407_v44  ;;  %v1248_v44 = vld [vmem:[%s1834_s3 + $0x70] sm:$0xff] }
  0xe9   : > { %1336 = vmatprep.subr.mxu1 %v406_v45 }
  0xea   : > { %1337 = vmatpush3.msra.mxu1 %v406_v45  ;;  %v1249_v45 = vld [vmem:[%s1834_s3 + $0x78] sm:$0xff] }
  0xeb   : > { %1338 = vmatprep.subr.mxu1 %v405_v46 }
  0xec   : > { %1339 = vmatpush3.msra.mxu1 %v405_v46  ;;  %v1258_v46 = vld [vmem:[%s1834_s3 + $0x80] sm:$0xff] }
  0xed   : > { %1341 = vmatmul.mubr.msk.f32.vlgmr.msra.gmra.mxu1 %vm437_vm2, %v410_v47  ;;  %v829_v47 = vpop.permute.xlu0 %828 }
  0xee   : > { %1343 = vmatprep.mubr.msk.f32.mxu1 %vm437_vm2, %v411_v48 }
  0xf1   : > { %1344 = vmatmul.mubr.msk.f32.gmra.mxu1 %vm437_vm2, %v412_v49  ;;  %v824_v49 = vpop.permute.xlu1 %823 }
  0xf2   : > { %1368 = vmatprep.mubr.msk.f32.mxu1 %vm437_vm2, %v1234_v6 }
 0x1ad   : > { %v1342_v52 = vpop.f32.mrf.mxu1 }
 0x1ae   : > { %v522_v59 = vadd.f32 %v1342_v52, %v425_v57 }
 0x1af   : > { %v516_v54 = vpop.f32.mrf.mxu1 }
 0x1b0   : > { %v517_v63 = vadd.f32 %v516_v54, %v420_v62  ;;  %v536_v1 = vmax.f32 %v522_v59, 0.0 }
 0x1b1   : > { %v1345_v55 = vpop.f32.mrf.mxu1 }
 0x1b2   : > { %v532_v56 = vadd.f32 %v1345_v55, %v435_v51  ;;  %v535_v2 = vmax.f32 %v517_v63, 0.0  ;;  %v1259_v63 = vld [vmem:[%s1834_s3 + $0x88] sm:$0xff] }
 0x1b3   : > { %v526_v58 = vpop.f32.mrf.mxu1 }
 0x1b4   : > { %v538_v60 = vmax.f32 %v532_v56, 0.0  ;;  %v527_v61 = vadd.f32 %v526_v58, %v430_v53  ;;  %v819_v53 = vpop.permute.xlu0 %818  ;;  %v814_v58 = vpop.permute.xlu1 %813 }
 0x1b6   : > { %v537_v0 = vmax.f32 %v527_v61, 0.0  ;;  %1346 = vmatprep.subr.mxu0 %v538_v60 }
 0x1b7   : > { %1347 = vmatpush3.msra.mxu0 %v538_v60 }
 0x1b8   : > { %1348 = vmatprep.subr.mxu0 %v537_v0 }
 0x1b9   : > { %1349 = vmatpush3.msra.mxu0 %v537_v0  ;;  %v1260_v0 = vld [vmem:[%s1834_s3 + $0x90] sm:$0xff] }
 0x1ba   : > { %1350 = vmatprep.subr.mxu0 %v536_v1 }
 0x1bb   : > { %1351 = vmatpush3.msra.mxu0 %v536_v1  ;;  %v1261_v1 = vld [vmem:[%s1834_s3 + $0x98] sm:$0xff] }
 0x1bc   : > { %1352 = vmatprep.subr.mxu0 %v535_v2 }
 0x1bd   : > { %1353 = vmatpush3.msra.mxu0 %v535_v2  ;;  %v1520_v2 = vmov 0.0  }
 0x1be   : > { %1355 = vmatmul.mubr.msk.f32.vlgmr.msra.gmra.mxu0 %vm437_vm2, %v1223_v3  ;;  %v960_v3 = vpop.permute.xlu0 %959 }
 0x1bf   : > { %1357 = vmatprep.mubr.msk.f32.mxu0 %vm437_vm2, %v1224_v4 }
 0x1c2   : > { %1358 = vmatmul.mubr.msk.f32.gmra.mxu0 %vm437_vm2, %v1225_v5  ;;  %v955_v5 = vpop.permute.xlu1 %954 }
 0x1c3   : > { %1382 = vmatprep.mubr.msk.f32.mxu0 %vm437_vm2, %v1246_v26 }
 0x27e   : > { %v1356_v8 = vpop.f32.mrf.mxu0 }
 0x27f   : > { %v653_v15 = vadd.f32 %v1356_v8, %v557_v13 }
 0x280   : > { %v647_v10 = vpop.f32.mrf.mxu0 }
 0x281   : > { %v648_v19 = vadd.f32 %v647_v10, %v552_v18  ;;  %v667_v21 = vmax.f32 %v653_v15, 0.0 }
 0x282   : > { %v1359_v11 = vpop.f32.mrf.mxu0 }
 0x283   : > { %v663_v12 = vadd.f32 %v1359_v11, %v567_v7  ;;  %v666_v22 = vmax.f32 %v648_v19, 0.0  ;;  %v1063_v19 = vld [vmem:[%s1836_s5] sm:$0x1] }
 0x284   : > { %v657_v14 = vpop.f32.mrf.mxu0 }
 0x285   : > { %v669_v16 = vmax.f32 %v663_v12, 0.0  ;;  %v658_v17 = vadd.f32 %v657_v14, %v562_v9  ;;  %v950_v9 = vpop.permute.xlu0 %949  ;;  %v945_v14 = vpop.permute.xlu1 %944 }
 0x287   : > { %v668_v20 = vmax.f32 %v658_v17, 0.0  ;;  %1360 = vmatprep.subr.mxu1 %v669_v16 }
 0x288   : > { %1361 = vmatpush3.msra.mxu1 %v669_v16 }
 0x289   : > { %1362 = vmatprep.subr.mxu1 %v668_v20 }
 0x28a   : > { %1363 = vmatpush3.msra.mxu1 %v668_v20  ;;  %v1065_v20 = vstv %s1064_s9 }
 0x28b   : > { %1364 = vmatprep.subr.mxu1 %v667_v21 }
 0x28c   : > { %1365 = vmatpush3.msra.mxu1 %v667_v21 }
 0x28d   : > { %1366 = vmatprep.subr.mxu1 %v666_v22 }
 0x28e   : > { %1367 = vmatpush3.msra.mxu1 %v666_v22 }
 0x28f   : > { %1369 = vmatmul.mubr.msk.f32.vlgmr.msra.gmra.mxu1 %vm437_vm2, %v1235_v23 }
 0x290   : > { %1371 = vmatprep.mubr.msk.f32.mxu1 %vm437_vm2, %v1236_v24 }
 0x293   : > { %1372 = vmatmul.mubr.msk.f32.gmra.mxu1 %vm437_vm2, %v1237_v25 }
 0x294   : > { %1396 = vmatprep.mubr.msk.f32.mxu1 %vm437_vm2, %v1258_v46 }
 0x34f   : > { %v1370_v28 = vpop.f32.mrf.mxu1 }
 0x350   : > { %v784_v35 = vadd.f32 %v1370_v28, %v688_v33 }
 0x351   : > { %v778_v30 = vpop.f32.mrf.mxu1 }
 0x352   : > { %v779_v39 = vadd.f32 %v778_v30, %v683_v38  ;;  %v798_v41 = vmax.f32 %v784_v35, 0.0 }
 0x353   : > { %v1373_v31 = vpop.f32.mrf.mxu1 }
 0x354   : > { %v794_v32 = vadd.f32 %v1373_v31, %v698_v27  ;;  %v797_v42 = vmax.f32 %v779_v39, 0.0 }
 0x355   : > { %v788_v34 = vpop.f32.mrf.mxu1 }
 0x356   : > { %v800_v36 = vmax.f32 %v794_v32, 0.0  ;;  %v789_v37 = vadd.f32 %v788_v34, %v693_v29 }
 0x358   : > { %v799_v40 = vmax.f32 %v789_v37, 0.0  ;;  %1374 = vmatprep.subr.mxu0 %v800_v36 }
 0x359   : > { %1375 = vmatpush3.msra.mxu0 %v800_v36 }
 0x35a   : > { %1376 = vmatprep.subr.mxu0 %v799_v40 }
 0x35b   : > { %1377 = vmatpush3.msra.mxu0 %v799_v40 }
 0x35c   : > { %1378 = vmatprep.subr.mxu0 %v798_v41 }
 0x35d   : > { %1379 = vmatpush3.msra.mxu0 %v798_v41 }
 0x35e   : > { %1380 = vmatprep.subr.mxu0 %v797_v42 }
 0x35f   : > { %1381 = vmatpush3.msra.mxu0 %v797_v42 }
 0x360   : > { %1383 = vmatmul.mubr.msk.f32.vlgmr.msra.gmra.mxu0 %vm437_vm2, %v1247_v43  ;;  %1402 = vmatprep.subr.mxu0 %v1520_v2 }
 0x361   : > { %1385 = vmatprep.mubr.msk.f32.mxu0 %vm437_vm2, %v1248_v44 }
 0x364   : > { %1386 = vmatmul.mubr.msk.f32.gmra.mxu0 %vm437_vm2, %v1249_v45 }
 0x365   : > { %1410 = vmatprep.mubr.msk.f32.mxu0 %vm1521_vm3, %v1520_v2 }
 0x420   : > { %v1384_v48 = vpop.f32.mrf.mxu0 }
 0x421   : > { %v915_v55 = vadd.f32 %v1384_v48, %v819_v53 }
 0x422   : > { %v909_v50 = vpop.f32.mrf.mxu0 }
 0x423   : > { %v910_v59 = vadd.f32 %v909_v50, %v814_v58  ;;  %v929_v61 = vmax.f32 %v915_v55, 0.0 }
 0x424   : > { %v1387_v51 = vpop.f32.mrf.mxu0 }
 0x425   : > { %v925_v52 = vadd.f32 %v1387_v51, %v829_v47  ;;  %v928_v62 = vmax.f32 %v910_v59, 0.0 }
 0x426   : > { %v919_v54 = vpop.f32.mrf.mxu0 }
 0x427   : > { %v931_v56 = vmax.f32 %v925_v52, 0.0  ;;  %v920_v57 = vadd.f32 %v919_v54, %v824_v49 }
 0x429   : > { %v930_v60 = vmax.f32 %v920_v57, 0.0  ;;  %1388 = vmatprep.subr.mxu1 %v931_v56 }
 0x42a   : > { %1389 = vmatpush3.msra.mxu1 %v931_v56 }
 0x42b   : > { %1390 = vmatprep.subr.mxu1 %v930_v60 }
 0x42c   : > { %1391 = vmatpush3.msra.mxu1 %v930_v60 }
 0x42d   : > { %1392 = vmatprep.subr.mxu1 %v929_v61 }
 0x42e   : > { %1393 = vmatpush3.msra.mxu1 %v929_v61 }
 0x42f   : > { %1394 = vmatprep.subr.mxu1 %v928_v62 }
 0x430   : > { %1395 = vmatpush3.msra.mxu1 %v928_v62 }
 0x431   : > { %1397 = vmatmul.mubr.msk.f32.vlgmr.msra.gmra.mxu1 %vm437_vm2, %v1259_v63 }
 0x432   : > { %1399 = vmatprep.mubr.msk.f32.mxu1 %vm437_vm2, %v1260_v0 }
 0x435   : > { %1400 = vmatmul.mubr.msk.f32.gmra.mxu1 %vm437_vm2, %v1261_v1 }
 0x4f1   : > { %v1398_v4 = vpop.f32.mrf.mxu1 }
 0x4f2   : > { %v1046_v11 = vadd.f32 %v1398_v4, %v950_v9 }
 0x4f3   : > { %v1040_v6 = vpop.f32.mrf.mxu1 }
 0x4f4   : > { %v1041_v15 = vadd.f32 %v1040_v6, %v945_v14  ;;  %v1060_v17 = vmax.f32 %v1046_v11, 0.0 }
 0x4f5   : > { %v1401_v7 = vpop.f32.mrf.mxu1 }
 0x4f6   : > { %v1056_v8 = vadd.f32 %v1401_v7, %v960_v3  ;;  %v1059_v18 = vmax.f32 %v1041_v15, 0.0 }
 0x4f7   : > { %v1050_v10 = vpop.f32.mrf.mxu1 }
 0x4f8   : > { %v1062_v12 = vmax.f32 %v1056_v8, 0.0  ;;  %v1051_v13 = vadd.f32 %v1050_v10, %v955_v5 }
 0x4fa   : > { %v1061_v16 = vmax.f32 %v1051_v13, 0.0  ;;  %1403 = vmatpush3.msra.mxu0 %v1062_v12 }
 0x4fb   : > { %1404 = vmatprep.subr.mxu0 %v1520_v2 }
 0x4fc   : > { %1405 = vmatpush3.msra.mxu0 %v1061_v16 }
 0x4fd   : > { %1406 = vmatprep.subr.mxu0 %v1520_v2 }
 0x4fe   : > { %1407 = vmatpush3.msra.mxu0 %v1060_v17 }
 0x4ff   : > { %1408 = vmatprep.subr.mxu0 %v1520_v2 }
 0x500   : > { %1409 = vmatpush3.msra.mxu0 %v1059_v18 }
 0x501   : > { %1411 = vmatmul.mubr.msk.f32.vlgmr.msra.gmra.mxu0 %vm437_vm2, %v1063_v19 }
 0x5c1   : > { %v1135_v21 = vpop.f32.mrf.mxu0 }
 0x5c2   : > { %v1136_v22 = vadd.f32 %v1135_v21, %v1065_v20 }
 0x5c3   : > { %v1412_v23 = vpop.f32.mrf.mxu0 }
 0x5c4   : > { %1139 = vst [vmem:[%s269_s15] sm:$0x1] %v1136_v22 }
 0x5c5   : > { %1470 = shalt.err (!%p1467_p3)
}
 0x5c6   : > { %s1471_s24 = scalar_lea.hbm %s1796_s19, 16  ;;  %s1475_s9 = scalar_lea.hbm %s1838_s7, 32 }
 0x5c7   : > { %p1472_p4 = scmp.ne.s32.totalorder %s1796_s19, %s1471_s24  ;;  %p1476_p9 = scmp.lt.s32.totalorder %s1796_s19, %s1838_s7 }
 0x5c8   : > { %p1477_p10 = scmp.lt.s32.totalorder %s1475_s9, %s1471_s24 }
 0x5c9   : > { %p1473_p7 = pnand %p1472_p4, %p1604_p5 }
 0x5ca   : > { %p1478_p11 = por %p1477_p10, %p1476_p9 }
 0x5cb   : > { %p1474_p8 = pneg %p1473_p7 }
 0x5cd   : > { %p1479_p12 = pnand %p1478_p11, %p1474_p8 }
 0x5cf   : > { %1482 = shalt.err (!%p1479_p12)
}
 0x5d0   : > { %1413 = dma.vmem_to_hbm [thread:$0]  (%p1604_p5), %s1154_s16, 16, %s1796_s19, %s1141_s20  }
 0x5d1 PF: > { %p1419_p13 = scmp.ge.s32.totalorder %s1517_s29, 2  ;;  %s1165_s15 = sand.u32 1, %s1505_s26  }
 0x5d2   : > { %s1166_s17 = scalar_lea.sflag [#allocation4], %s1165_s15 }
 0x5d3   : > { %p1416_p0 = pnand %p1419_p13, %p1608_p6 }
 0x5d5   : > { %p1417_p1 = pneg %p1416_p0 }
 0x5d7   : > { %1500 = dma.done.wait (%p1417_p1), %s1166_s17, 16  }
 0x5d8   : > { %1502 = vsyncadd (%p1417_p1), %s1166_s17, 4294967280  ;;  %p18_p2 = scmp.ge.s32.totalorder %s1591_s8, 4   ;;  %s1841_s26 = smov %s1509_s27 }
 0x5d9   : > { %s1842_s27 = smov %s1513_s28  ;;  %s1843_s28 = smov %s1602_s11 }
 0x5da   : > { %s1844_s29 = smov %s1591_s8  ;;  %20 = sbr.rel (!%p18_p2) target bundleno = 5 (0x5), region = 91 }
 0x5df   :  { %1170 = vsyncpa [#allocation4], 1 }
 0x5e0   :  { %1172 = vsyncpa [#allocation4 + $0x1], 1 }

</bundles_post_ra>
